<compile_context>
chip_gen: v7x
topology: tpu7x:2x2x1
jax: 0.10.0
libtpu: 0.0.40
codegen_flags: <defaults>
</compile_context>

<pallas_src>
import math
from functools import partial

import jax
import jax.numpy as jnp
from jax.experimental import pallas as pl
from jax.experimental.pallas import tpu as pltpu


def _round_up(x, m):
    return ((x + m - 1) // m) * m


# ----------------------------------------------------------------------------
# Pallas kernel: one (batch, head) step of MaskedCausalAttention
# ----------------------------------------------------------------------------
def _mca_kernel(x_ref,
                wq_ref, bq_ref, wk_ref, bk_ref, wv_ref, bv_ref,
                wp_ref, bp_ref,
                o_ref, *, scale):
    h = pl.program_id(1)

    x = x_ref[0].astype(jnp.bfloat16)                      # (T, H_pad), bf16 for MXU
    T = x.shape[0]

    # per-head q / k / v projections: (T, H_pad) @ (H_pad, D_pad), f32 accumulation
    q = jnp.dot(x, wq_ref[...], preferred_element_type=jnp.float32) + bq_ref[...]
    k = jnp.dot(x, wk_ref[...], preferred_element_type=jnp.float32) + bk_ref[...]
    v = jnp.dot(x, wv_ref[...], preferred_element_type=jnp.float32) + bv_ref[...]

    # causal scores + f32 softmax (padded D columns are zero -> no effect on scores)
    s = jnp.dot(q.astype(jnp.bfloat16), k.astype(jnp.bfloat16).T,
                preferred_element_type=jnp.float32) * scale          # (T, T)
    row = jax.lax.broadcasted_iota(jnp.int32, (T, T), 0)
    col = jax.lax.broadcasted_iota(jnp.int32, (T, T), 1)
    s = jnp.where(col <= row, s, jnp.float32(-jnp.inf))

    m = jnp.max(s, axis=-1, keepdims=True)
    e = jnp.exp(s - m)
    p = e * pl.reciprocal(jnp.sum(e, axis=-1, keepdims=True), approx=True)

    # attention @ V, then this head's slice of the output projection
    att = jnp.dot(p.astype(jnp.bfloat16), v.astype(jnp.bfloat16),
                  preferred_element_type=jnp.float32)                # (T, D_pad)
    contrib = jnp.dot(att.astype(jnp.bfloat16), wp_ref[...],
                      preferred_element_type=jnp.float32)            # (T, H_pad)

    # accumulate over the head grid axis; bias added once
    @pl.when(h == 0)
    def _():
        o_ref[0] = contrib + bp_ref[...]

    @pl.when(h != 0)
    def _():
        o_ref[0] = o_ref[0] + contrib


# ----------------------------------------------------------------------------
# Wrapper: padding to lane-dense per-head layout + pallas_call
# ----------------------------------------------------------------------------
def masked_causal_attention(x, params, n_heads):
    """MaskedCausalAttention.forward (eval mode: dropout == identity)."""
    B, T, H = x.shape
    assert H % n_heads == 0
    D = H // n_heads
    D_pad = _round_up(D, 128)          # lane-dense per-head width
    H_pad = n_heads * D_pad

    def pad_in_proj(w, b):
        # w: (H, H) stored (in, out); head h owns out-cols [h*D, (h+1)*D)
        w3 = jnp.pad(w.reshape(H, n_heads, D),
                     ((0, H_pad - H), (0, 0), (0, D_pad - D)))
        b2 = jnp.pad(b.reshape(n_heads, D), ((0, 0), (0, D_pad - D)))
        return (w3.reshape(H_pad, H_pad).astype(jnp.bfloat16),
                b2.reshape(1, H_pad).astype(jnp.float32))

    def pad_out_proj(w, b):
        # w: (H, H) stored (in, out); head h owns in-rows [h*D, (h+1)*D)
        w3 = jnp.pad(w.reshape(n_heads, D, H),
                     ((0, 0), (0, D_pad - D), (0, H_pad - H)))
        b2 = jnp.pad(b.reshape(1, H), ((0, 0), (0, H_pad - H)))
        return (w3.reshape(H_pad, H_pad).astype(jnp.bfloat16),
                b2.astype(jnp.float32))

    wq, bq = pad_in_proj(params["wq"], params["bq"])
    wk, bk = pad_in_proj(params["wk"], params["bk"])
    wv, bv = pad_in_proj(params["wv"], params["bv"])
    wp, bp = pad_out_proj(params["wp"], params["bp"])

    x_pad = jnp.pad(x.astype(jnp.float32), ((0, 0), (0, 0), (0, H_pad - H)))

    w_spec = pl.BlockSpec((H_pad, D_pad), lambda b, h: (0, h))   # per-head weight slab
    b_spec = pl.BlockSpec((1, D_pad), lambda b, h: (0, h))       # per-head bias slab

    out_pad = pl.pallas_call(
        partial(_mca_kernel, scale=1.0 / math.sqrt(D)),
        out_shape=jax.ShapeDtypeStruct((B, T, H_pad), jnp.float32),
        grid=(B, n_heads),
        in_specs=[
            pl.BlockSpec((1, T, H_pad), lambda b, h: (b, 0, 0)),   # x
            w_spec, b_spec,                                        # q
            w_spec, b_spec,                                        # k
            w_spec, b_spec,                                        # v
            pl.BlockSpec((D_pad, H_pad), lambda b, h: (h, 0)),     # proj weight rows
            pl.BlockSpec((1, H_pad), lambda b, h: (0, 0)),         # proj bias
        ],
        out_specs=pl.BlockSpec((1, T, H_pad), lambda b, h: (b, 0, 0)),
        compiler_params=pltpu.CompilerParams(
            dimension_semantics=("parallel", "arbitrary"),
            vmem_limit_bytes=32 * 1024 * 1024),
    )(x_pad, wq, bq, wk, bk, wv, bv, wp, bp)

    return out_pad[:, :, :H]


# ----------------------------------------------------------------------------
# Plain-JAX reference (f32, exact softmax) for a correctness sanity check
# ----------------------------------------------------------------------------
def reference_masked_causal_attention(x, params, n_heads):
    B, T, H = x.shape
    D = H // n_heads
    q = x @ params["wq"] + params["bq"]
    k = x @ params["wk"] + params["bk"]
    v = x @ params["wv"] + params["bv"]
    q = q.reshape(B, T, n_heads, D).transpose(0, 2, 1, 3)
    k = k.reshape(B, T, n_heads, D).transpose(0, 2, 1, 3)
    v = v.reshape(B, T, n_heads, D).transpose(0, 2, 1, 3)
    w = jnp.einsum("bhtd,bhsd->bhts", q, k) / math.sqrt(D)
    mask = jnp.tril(jnp.ones((T, T), dtype=bool))
    w = jnp.where(mask, w, -jnp.inf)
    p = jax.nn.softmax(w, axis=-1)
    att = jnp.einsum("bhts,bhsd->bhtd", p, v)
    att = att.transpose(0, 2, 1, 3).reshape(B, T, H)
    return att @ params["wp"] + params["bp"]


def init_params(key, hidden_dim):
    """nn.Linear-style init (weights stored (in, out), so kernel computes x @ W + b)."""
    H = hidden_dim
    ks = jax.random.split(key, 8)
    bound = 1.0 / math.sqrt(H)

    def lin(kw, kb):
        w = jax.random.uniform(kw, (H, H), jnp.float32, -bound, bound)
        b = jax.random.uniform(kb, (H,), jnp.float32, -bound, bound)
        return w, b

    wq, bq = lin(ks[0], ks[1])
    wk, bk = lin(ks[2], ks[3])
    wv, bv = lin(ks[4], ks[5])
    wp, bp = lin(ks[6], ks[7])
    return dict(wq=wq, bq=bq, wk=wk, bk=bk, wv=wv, bv=bv, wp=wp, bp=bp)


# ----------------------------------------------------------------------------
if __name__ == "__main__":
    B, context_len, hidden_dim, n_heads = 2, 8, 32, 2

    key = jax.random.PRNGKey(0)
    kp, kx = jax.random.split(key)
    params = init_params(kp, hidden_dim)
    x = jax.random.normal(kx, (B, context_len, hidden_dim), jnp.float32)

    out = masked_causal_attention(x, params, n_heads)
    out = jax.block_until_ready(out)
    assert out.shape == (B, context_len, hidden_dim)

    ref = reference_masked_causal_attention(x, params, n_heads)
    err = float(jnp.max(jnp.abs(out - ref)))
    assert err < 5e-2, f"max abs err {err} vs f32 reference"

    print("KERNEL_OK")
</pallas_src>

<mosaic_0001>
module attributes {stable_mosaic.version = 11 : i64} {
  func.func @_mca_kernel(%arg0: i32, %arg1: i32, %arg2: memref<1x8x256xf32, #tpu.memory_space<vmem>>, %arg3: memref<256x128xbf16, #tpu.memory_space<vmem>>, %arg4: memref<1x128xf32, #tpu.memory_space<vmem>>, %arg5: memref<256x128xbf16, #tpu.memory_space<vmem>>, %arg6: memref<1x128xf32, #tpu.memory_space<vmem>>, %arg7: memref<256x128xbf16, #tpu.memory_space<vmem>>, %arg8: memref<1x128xf32, #tpu.memory_space<vmem>>, %arg9: memref<128x256xbf16, #tpu.memory_space<vmem>>, %arg10: memref<1x256xf32, #tpu.memory_space<vmem>>, %arg11: memref<1x8x256xf32, #tpu.memory_space<vmem>>) attributes {dimension_semantics = [#tpu.dimension_semantics<parallel>, #tpu.dimension_semantics<arbitrary>], iteration_bounds = array<i64: 2, 2>, scalar_prefetch = 0 : i64, scratch_operands = 0 : i64, tpu.core_type = #tpu.core_type<tc>, window_params = [{transform_indices = @transform_0, window_bounds = array<i64: 1, 8, 256>}, {transform_indices = @transform_1, window_bounds = array<i64: 256, 128>}, {transform_indices = @transform_2, window_bounds = array<i64: 1, 128>}, {transform_indices = @transform_3, window_bounds = array<i64: 256, 128>}, {transform_indices = @transform_4, window_bounds = array<i64: 1, 128>}, {transform_indices = @transform_5, window_bounds = array<i64: 256, 128>}, {transform_indices = @transform_6, window_bounds = array<i64: 1, 128>}, {transform_indices = @transform_7, window_bounds = array<i64: 128, 256>}, {pipeline_mode = #tpu.pipeline_mode<synchronous>, transform_indices = @transform_8, window_bounds = array<i64: 1, 256>}, {transform_indices = @transform_9, window_bounds = array<i64: 1, 8, 256>}]} {
    %c0 = arith.constant 0 : index
    %c0_0 = arith.constant 0 : index
    %c0_1 = arith.constant 0 : index
    %0 = vector.load %arg2[%c0, %c0_0, %c0_1] : memref<1x8x256xf32, #tpu.memory_space<vmem>>, vector<1x8x256xf32>
    %1 = vector.shape_cast %0 : vector<1x8x256xf32> to vector<8x256xf32>
    %2 = arith.truncf %1 : vector<8x256xf32> to vector<8x256xbf16>
    %c0_2 = arith.constant 0 : index
    %c0_3 = arith.constant 0 : index
    %3 = vector.load %arg3[%c0_2, %c0_3] : memref<256x128xbf16, #tpu.memory_space<vmem>>, vector<256x128xbf16>
    %cst = arith.constant dense<0.000000e+00> : vector<8x128xf32>
    %4 = tpu.matmul %2, %3, %cst {dimension_numbers = #tpu.dot_dimension_numbers<[1], [0], [0], [1], [0, 0, 1, 1], [], []>} : vector<8x256xbf16>, vector<256x128xbf16>, vector<8x128xf32> -> vector<8x128xf32>
    %c0_4 = arith.constant 0 : index
    %c0_5 = arith.constant 0 : index
    %5 = vector.load %arg4[%c0_4, %c0_5] : memref<1x128xf32, #tpu.memory_space<vmem>>, vector<1x128xf32>
    %6 = vector.broadcast %5 : vector<1x128xf32> to vector<8x128xf32>
    %7 = arith.addf %4, %6 : vector<8x128xf32>
    %c0_6 = arith.constant 0 : index
    %c0_7 = arith.constant 0 : index
    %8 = vector.load %arg5[%c0_6, %c0_7] : memref<256x128xbf16, #tpu.memory_space<vmem>>, vector<256x128xbf16>
    %cst_8 = arith.constant dense<0.000000e+00> : vector<8x128xf32>
    %9 = tpu.matmul %2, %8, %cst_8 {dimension_numbers = #tpu.dot_dimension_numbers<[1], [0], [0], [1], [0, 0, 1, 1], [], []>} : vector<8x256xbf16>, vector<256x128xbf16>, vector<8x128xf32> -> vector<8x128xf32>
    %c0_9 = arith.constant 0 : index
    %c0_10 = arith.constant 0 : index
    %10 = vector.load %arg6[%c0_9, %c0_10] : memref<1x128xf32, #tpu.memory_space<vmem>>, vector<1x128xf32>
    %11 = vector.broadcast %10 : vector<1x128xf32> to vector<8x128xf32>
    %12 = arith.addf %9, %11 : vector<8x128xf32>
    %c0_11 = arith.constant 0 : index
    %c0_12 = arith.constant 0 : index
    %13 = vector.load %arg7[%c0_11, %c0_12] : memref<256x128xbf16, #tpu.memory_space<vmem>>, vector<256x128xbf16>
    %cst_13 = arith.constant dense<0.000000e+00> : vector<8x128xf32>
    %14 = tpu.matmul %2, %13, %cst_13 {dimension_numbers = #tpu.dot_dimension_numbers<[1], [0], [0], [1], [0, 0, 1, 1], [], []>} : vector<8x256xbf16>, vector<256x128xbf16>, vector<8x128xf32> -> vector<8x128xf32>
    %c0_14 = arith.constant 0 : index
    %c0_15 = arith.constant 0 : index
    %15 = vector.load %arg8[%c0_14, %c0_15] : memref<1x128xf32, #tpu.memory_space<vmem>>, vector<1x128xf32>
    %16 = vector.broadcast %15 : vector<1x128xf32> to vector<8x128xf32>
    %17 = arith.addf %14, %16 : vector<8x128xf32>
    %18 = arith.truncf %7 : vector<8x128xf32> to vector<8x128xbf16>
    %19 = arith.truncf %12 : vector<8x128xf32> to vector<8x128xbf16>
    %20 = tpu.transpose %19, [1, 0] : vector<8x128xbf16> -> vector<128x8xbf16>
    %cst_16 = arith.constant dense<0.000000e+00> : vector<8x8xf32>
    %21 = tpu.matmul %18, %20, %cst_16 {dimension_numbers = #tpu.dot_dimension_numbers<[1], [0], [0], [1], [0, 0, 1, 1], [], []>} : vector<8x128xbf16>, vector<128x8xbf16>, vector<8x8xf32> -> vector<8x8xf32>
    %cst_17 = arith.constant 2.500000e-01 : f32
    %22 = vector.broadcast %cst_17 : f32 to vector<8x8xf32>
    %23 = arith.mulf %21, %22 : vector<8x8xf32>
    %24 = tpu.iota {dimensions = array<i32: 0>} : vector<8x8xi32>
    %25 = tpu.iota {dimensions = array<i32: 1>} : vector<8x8xi32>
    %26 = arith.cmpi sle, %25, %24 : vector<8x8xi32>
    %cst_18 = arith.constant 0xFF800000 : f32
    %27 = vector.broadcast %cst_18 : f32 to vector<8x8xf32>
    %28 = arith.select %26, %23, %27 : vector<8x8xi1>, vector<8x8xf32>
    %cst_19 = arith.constant dense<0xFF800000> : vector<8xf32>
    %29 = vector.multi_reduction <maximumf>, %28, %cst_19 [1] : vector<8x8xf32> to vector<8xf32>
    %30 = vector.shape_cast %29 : vector<8xf32> to vector<8x1xf32>
    %31 = vector.broadcast %30 : vector<8x1xf32> to vector<8x8xf32>
    %32 = arith.subf %28, %31 : vector<8x8xf32>
    %33 = math.exp %32 : vector<8x8xf32>
    %cst_20 = arith.constant dense<0.000000e+00> : vector<8xf32>
    %34 = vector.multi_reduction <add>, %33, %cst_20 [1] : vector<8x8xf32> to vector<8xf32>
    %35 = vector.shape_cast %34 : vector<8xf32> to vector<8x1xf32>
    %36 = tpu.reciprocal %35 {approx = true} : vector<8x1xf32> -> vector<8x1xf32>
    %37 = vector.broadcast %36 : vector<8x1xf32> to vector<8x8xf32>
    %38 = arith.mulf %33, %37 : vector<8x8xf32>
    %39 = arith.truncf %38 : vector<8x8xf32> to vector<8x8xbf16>
    %40 = arith.truncf %17 : vector<8x128xf32> to vector<8x128xbf16>
    %cst_21 = arith.constant dense<0.000000e+00> : vector<8x128xf32>
    %41 = tpu.matmul %39, %40, %cst_21 {dimension_numbers = #tpu.dot_dimension_numbers<[1], [0], [0], [1], [0, 0, 1, 1], [], []>} : vector<8x8xbf16>, vector<8x128xbf16>, vector<8x128xf32> -> vector<8x128xf32>
    %42 = arith.truncf %41 : vector<8x128xf32> to vector<8x128xbf16>
    %c0_22 = arith.constant 0 : index
    %c0_23 = arith.constant 0 : index
    %43 = vector.load %arg9[%c0_22, %c0_23] : memref<128x256xbf16, #tpu.memory_space<vmem>>, vector<128x256xbf16>
    %cst_24 = arith.constant dense<0.000000e+00> : vector<8x256xf32>
    %44 = tpu.matmul %42, %43, %cst_24 {dimension_numbers = #tpu.dot_dimension_numbers<[1], [0], [0], [1], [0, 0, 1, 1], [], []>} : vector<8x128xbf16>, vector<128x256xbf16>, vector<8x256xf32> -> vector<8x256xf32>
    %c0_i32 = arith.constant 0 : i32
    %45 = arith.cmpi eq, %arg1, %c0_i32 : i32
    %46 = arith.extui %45 : i1 to i32
    %c0_i32_25 = arith.constant 0 : i32
    %47 = arith.cmpi ne, %46, %c0_i32_25 : i32
    scf.if %47 {
      %c0_28 = arith.constant 0 : index
      %c0_29 = arith.constant 0 : index
      %51 = vector.load %arg10[%c0_28, %c0_29] : memref<1x256xf32, #tpu.memory_space<vmem>>, vector<1x256xf32>
      %52 = vector.broadcast %51 : vector<1x256xf32> to vector<8x256xf32>
      %53 = arith.addf %44, %52 : vector<8x256xf32>
      %c0_30 = arith.constant 0 : index
      %c0_31 = arith.constant 0 : index
      %c0_32 = arith.constant 0 : index
      %54 = vector.load %arg11[%c0_30, %c0_31, %c0_32] : memref<1x8x256xf32, #tpu.memory_space<vmem>>, vector<1x8x256xf32>
      %55 = vector.shape_cast %54 : vector<1x8x256xf32> to vector<8x256xf32>
      %56 = vector.shape_cast %53 : vector<8x256xf32> to vector<1x8x256xf32>
      tpu.vector_store %arg11[%c0_30, %c0_31, %c0_32], %56 {strides = array<i32>} : memref<1x8x256xf32, #tpu.memory_space<vmem>>, vector<1x8x256xf32>,
    } else {
    }
    %c0_i32_26 = arith.constant 0 : i32
    %48 = arith.cmpi ne, %arg1, %c0_i32_26 : i32
    %49 = arith.extui %48 : i1 to i32
    %c0_i32_27 = arith.constant 0 : i32
    %50 = arith.cmpi ne, %49, %c0_i32_27 : i32
    scf.if %50 {
      %c0_28 = arith.constant 0 : index
      %c0_29 = arith.constant 0 : index
      %c0_30 = arith.constant 0 : index
      %51 = vector.load %arg11[%c0_28, %c0_29, %c0_30] : memref<1x8x256xf32, #tpu.memory_space<vmem>>, vector<1x8x256xf32>
      %52 = vector.shape_cast %51 : vector<1x8x256xf32> to vector<8x256xf32>
      %53 = arith.addf %52, %44 : vector<8x256xf32>
      %c0_31 = arith.constant 0 : index
      %c0_32 = arith.constant 0 : index
      %c0_33 = arith.constant 0 : index
      %54 = vector.load %arg11[%c0_31, %c0_32, %c0_33] : memref<1x8x256xf32, #tpu.memory_space<vmem>>, vector<1x8x256xf32>
      %55 = vector.shape_cast %54 : vector<1x8x256xf32> to vector<8x256xf32>
      %56 = vector.shape_cast %53 : vector<8x256xf32> to vector<1x8x256xf32>
      tpu.vector_store %arg11[%c0_31, %c0_32, %c0_33], %56 {strides = array<i32>} : memref<1x8x256xf32, #tpu.memory_space<vmem>>, vector<1x8x256xf32>,
    } else {
    }
    return
  }
  func.func @transform_0(%arg0: i32, %arg1: i32) -> (i32, i32, i32) {
    %c0_i32 = arith.constant 0 : i32
    %c0_i32_0 = arith.constant 0 : i32
    %c0_i32_1 = arith.constant 0 : i32
    return %arg0, %c0_i32, %c0_i32_0 : i32, i32, i32
  }
  func.func @transform_1(%arg0: i32, %arg1: i32) -> (i32, i32) {
    %c0_i32 = arith.constant 0 : i32
    %c0_i32_0 = arith.constant 0 : i32
    return %c0_i32, %arg1 : i32, i32
  }
  func.func @transform_2(%arg0: i32, %arg1: i32) -> (i32, i32) {
    %c0_i32 = arith.constant 0 : i32
    %c0_i32_0 = arith.constant 0 : i32
    return %c0_i32, %arg1 : i32, i32
  }
  func.func @transform_3(%arg0: i32, %arg1: i32) -> (i32, i32) {
    %c0_i32 = arith.constant 0 : i32
    %c0_i32_0 = arith.constant 0 : i32
    return %c0_i32, %arg1 : i32, i32
  }
  func.func @transform_4(%arg0: i32, %arg1: i32) -> (i32, i32) {
    %c0_i32 = arith.constant 0 : i32
    %c0_i32_0 = arith.constant 0 : i32
    return %c0_i32, %arg1 : i32, i32
  }
  func.func @transform_5(%arg0: i32, %arg1: i32) -> (i32, i32) {
    %c0_i32 = arith.constant 0 : i32
    %c0_i32_0 = arith.constant 0 : i32
    return %c0_i32, %arg1 : i32, i32
  }
  func.func @transform_6(%arg0: i32, %arg1: i32) -> (i32, i32) {
    %c0_i32 = arith.constant 0 : i32
    %c0_i32_0 = arith.constant 0 : i32
    return %c0_i32, %arg1 : i32, i32
  }
  func.func @transform_7(%arg0: i32, %arg1: i32) -> (i32, i32) {
    %c0_i32 = arith.constant 0 : i32
    %c0_i32_0 = arith.constant 0 : i32
    return %arg1, %c0_i32 : i32, i32
  }
  func.func @transform_8(%arg0: i32, %arg1: i32) -> (i32, i32) {
    %c0_i32 = arith.constant 0 : i32
    %c0_i32_0 = arith.constant 0 : i32
    %c0_i32_1 = arith.constant 0 : i32
    return %c0_i32, %c0_i32_0 : i32, i32
  }
  func.func @transform_9(%arg0: i32, %arg1: i32) -> (i32, i32, i32) {
    %c0_i32 = arith.constant 0 : i32
    %c0_i32_0 = arith.constant 0 : i32
    %c0_i32_1 = arith.constant 0 : i32
    return %arg0, %c0_i32, %c0_i32_0 : i32, i32, i32
  }
}

</mosaic_0001>

<bundles_post_ra>
// kernel: tpu_custom_call.1
= control target key start
LH: loop header
LB: loop body
LE: loop exit
PB: predicated region body
PF: predicated region fallthrough
CT: control target
= control target key end

     0   :  { %s2840_s0 = inlined_call_operand.hbm [shape: f32[2,8,256], index: 0, kind: input, shape index: {}]   ;;  %s2841_s1 = inlined_call_operand.hbm [shape: bf16[256,256], index: 1, kind: input, shape index: {}]   ;;  %s2842_s2 = inlined_call_operand.vmem [shape: f32[1,256], index: 2, kind: input, shape index: {}]   ;;  %s2843_s3 = inlined_call_operand.hbm [shape: bf16[256,256], index: 3, kind: input, shape index: {}]   ;;  %s2844_s4 = inlined_call_operand.vmem [shape: f32[1,256], index: 4, kind: input, shape index: {}]   ;;  %s2845_s5 = inlined_call_operand.hbm [shape: bf16[256,256], index: 5, kind: input, shape index: {}]   ;;  %s2846_s6 = inlined_call_operand.vmem [shape: f32[1,256], index: 6, kind: input, shape index: {}]   ;;  %s2847_s7 = inlined_call_operand.hbm [shape: bf16[256,256], index: 7, kind: input, shape index: {}]   ;;  %s2848_s8 = inlined_call_operand.vmem [shape: f32[1,256], index: 8, kind: input, shape index: {}]   ;;  %s2849_s9 = inlined_call_operand.hbm [shape: f32[2,8,256], index: 9, kind: output, shape index: {}]  }
   0x1   :  { %2879 = sst [smem:[#allocation31_spill]] %s2841_s1 }
   0x2   :  { %2880 = sst [smem:[#allocation32_spill]] %s2842_s2 }
   0x3   :  { %2881 = sst [smem:[#allocation33_spill]] %s2844_s4 }
   0x4   :  { %2882 = sst [smem:[#allocation34_spill]] %s2845_s5 }
   0x5   :  { %2883 = sst [smem:[#allocation35_spill]] %s2846_s6 }
   0x6   :  { %2884 = sst [smem:[#allocation36_spill]] %s2848_s8 }
   0x7   :  { %2885 = sst [smem:[#allocation37_spill]] %s2849_s9 }
   0x8   :  { %14 = vsyncpa [#allocation3], 0 }
   0x9   :  { %16 = vsyncpa [#allocation3 + $0x1], 0 }
   0xa   :  { %17 = vsyncpa [#allocation6], 0 }
   0xb   :  { %19 = vsyncpa [#allocation6 + $0x1], 0 }
   0xc   :  { %20 = vsyncpa [#allocation9], 0 }
   0xd   :  { %22 = vsyncpa [#allocation9 + $0x1], 0 }
   0xe   :  { %23 = vsyncpa [#allocation4], 0 }
   0xf   :  { %25 = vsyncpa [#allocation4 + $0x1], 0  ;;  %s2308_s30 = smov 0   ;;  %s2310_s10 = smov 0  }
  0x10   :  { %s2312_s11 = smov 0   ;;  %s2314_s12 = smov 0  }
  0x11   :  { %s2316_s13 = smov 0   ;;  %s2318_s14 = smov 0  }
  0x12   :  { %s2320_s15 = smov 0   ;;  %s2322_s16 = smov 0  }
  0x13   :  { %s2324_s17 = smov 0   ;;  %s2326_s18 = smov 0  }
  0x14   :  { %s2328_s19 = smov 0  }
  0x15 LB: > { %2886 = sst [smem:[#allocation16_spill]] %s2211_s11  ;;  %p2853_p0 = scmp.eq.s32.totalorder %s2243_s19, 0  ;;  %s2243_s19 = sphi %s2328_s19, %s31_s19   ;;  %s2239_s18 = sphi %s2326_s18, %s2945_s18   ;;  %s2235_s17 = sphi %s2324_s17, %s2951_s17   ;;  %s2231_s16 = sphi %s2322_s16, %s2943_s16   ;;  %s2227_s15 = sphi %s2320_s15, %s2950_s15   ;;  %s2223_s14 = sphi %s2318_s14, %s2942_s14   ;;  %s2219_s13 = sphi %s2316_s13, %s2949_s13   ;;  %s2215_s12 = sphi %s2314_s12, %s2948_s12   ;;  %s2211_s11 = sphi %s2312_s11, %s2940_s11   ;;  %s2207_s10 = sphi %s2310_s10, %s2947_s10   ;;  %s2203_s30 = sphi %s2308_s30, %s2946_s30  }
  0x16   : > { %2887 = sst [smem:[#allocation17_spill]] %s2215_s12  ;;  %p83_p1 = scmp.ne.s32.totalorder %s2211_s11, %s2207_s10 }
  0x17   : > { %2888 = sst [smem:[#allocation18_spill]] %s2223_s14  ;;  %p2852_p2 = scmp.lt.s32.totalorder %s2243_s19, 4 }
  0x18   : > { %2889 = sst [smem:[#allocation19_spill]] %s2227_s15  ;;  %s2851_s21 = sand.u32 1, %s2243_s19  }
  0x19   : > { %2890 = sst [smem:[#allocation20_spill]] %s2231_s16  ;;  %p85_p3 = por %p83_p1, %p2853_p0 }
  0x1a   : > { %2891 = sst [smem:[#allocation21_spill]] %s2239_s18  ;;  %s340_s22 = sand.u32 1, %s2211_s11  }
  0x1b   : > { %s2373_s23 = sshll.u32 %s2235_s17, 6  ;;  %s2375_s24 = sshll.u32 %s340_s22, 7 }
  0x1c   : > { %s2892_s1 = sld [smem:[#allocation31_spill]]  ;;  %p2385_p4 = pnand %p2852_p2, %p85_p3 }
  0x1d   : > { %s342_s29 = scalar_lea.vmem [#allocation5], %s2375_s24  ;;  %s2394_s22 = scalar_lea.sflag [#allocation6], %s2851_s21 }
  0x1e   : > { %s2893_s28 = scalar_select %p2385_p4, 1, 0 }
  0x1f   : > { %s348_s20 = sshll.u32 %s342_s29, 4  ;;  %p2400_p6 = pneg %p2385_p4  ;;  %s2390_s20 = int_to_ptr.vmem [resolvable:$true] %s348_s20 }
  0x22   : > { %s2381_s27 = scalar_lea.hbm %s2892_s1, %s2373_s23  ;;  %s1968_s29 = scalar_lea.hbm %s2892_s1, 4096 }
  0x23   : > { %s1963_s25 = scalar_lea.hbm %s2381_s27, 2048  ;;  %p1969_p9 = scmp.lt.u32.totalorder %s2381_s27, %s2892_s1 }
  0x24   : > { %p1964_p5 = scmp.ne.s32.totalorder %s2381_s27, %s1963_s25  ;;  %p1970_p10 = scmp.lt.u32.totalorder %s1968_s29, %s1963_s25 }
  0x25   : > { %p1972_p12 = scmp.lt.u32.totalorder %s1963_s25, %s2381_s27 }
  0x26   : > { %p1966_p7 = pnand %p2400_p6, %p1964_p5  ;;  %p1971_p11 = por %p1970_p10, %p1969_p9 }
  0x28   : > { %p1967_p8 = pneg %p1966_p7  ;;  %p1973_p13 = por %p1972_p12, %p1971_p11 }
  0x2a   : > { %p1974_p1 = pnand %p1973_p13, %p1967_p8 }
  0x2c   : > { %1977 = shalt.err (!%p1974_p1)
}
  0x2d   : > { %s1978_s21 = scalar_lea.vmem %s2390_s20, 2048  ;;  %s2245_s9 = smov [#allocation5]  }
  0x2e   : > { %p1979_p3 = scmp.ne.s32.totalorder %s2390_s20, %s1978_s21  ;;  %s1983_s16 = sshll.u32 %s2245_s9, 4  ;;  %s1984_s16 = int_to_ptr.vmem [resolvable:$false] %s1983_s16 }
  0x2f   : > { %s1985_s6 = scalar_lea.vmem %s1984_s16, 4096  ;;  %p1986_p2 = scmp.lt.s32.totalorder %s2390_s20, %s1984_s16 }
  0x30   : > { %p1981_p5 = pnand %p1979_p3, %p2400_p6  ;;  %p1987_p0 = scmp.lt.s32.totalorder %s1985_s6, %s1978_s21 }
  0x32   : > { %p1982_p7 = pneg %p1981_p5  ;;  %p1988_p9 = por %p1987_p0, %p1986_p2 }
  0x34   : > { %p1989_p10 = pnand %p1988_p9, %p1982_p7 }
  0x36   : > { %1992 = shalt.err (!%p1989_p10)
}
  0x37   : > { %s2854_s8 = smov 128   ;;  %s2856_s25 = smov 64  }
  0x38   : > { %s2858_s29 = smov 4   ;;  %p1590_p0 = scmp.ge.s32.totalorder %s2243_s19, 1 }
  0x39   : > { %1776 = dma.hbm_to_vmem [thread:$0]  (!%p2385_p4), %s2381_s27, 2048, %s2390_s20, %s2394_s22, %s2854_s8, %s2856_s25, %s2858_s29  }
  0x3a   : > { %p436_p2 = scmp.lt.s32.totalorder %s2243_s19, 5  ;;  %s2897_s5 = sld [smem:[#allocation34_spill]] }
  0x3b   : > { %s394_s1 = scalar_lea.vmem [#allocation8], %s2375_s24  ;;  %s2898_s20 = sand.u32 1, %s2243_s19  }
  0x3c   : > { %p2429_p8 = pnand %p1590_p0, %p436_p2  ;;  %s400_s2 = sshll.u32 %s394_s1, 4  ;;  %s2440_s2 = int_to_ptr.vmem [resolvable:$true] %s400_s2 }
  0x3d   : > { %s2444_s27 = scalar_lea.sflag [#allocation9], %s2898_s20 }
  0x3e   : > { %s2895_s21 = scalar_select %p2429_p8, 1, 0 }
  0x3f   : > { %2899 = sst [smem:[#allocation23_spill]] %s2444_s27 }
  0x40   : > { %2896 = sst [smem:[#allocation22_spill]] %s2895_s21  ;;  %s2437_s6 = scalar_lea.hbm %s2897_s5, %s2373_s23 }
  0x41   : > { %s1993_s8 = scalar_lea.hbm %s2437_s6, 2048  ;;  %s1998_s16 = scalar_lea.hbm %s2897_s5, 4096 }
  0x42   : > { %p1994_p11 = scmp.ne.s32.totalorder %s2437_s6, %s1993_s8  ;;  %p1999_p1 = scmp.lt.u32.totalorder %s2437_s6, %s2897_s5 }
  0x43   : > { %p2000_p3 = scmp.lt.u32.totalorder %s1998_s16, %s1993_s8  ;;  %p2002_p7 = scmp.lt.u32.totalorder %s1993_s8, %s2437_s6 }
  0x44   : > { %p1996_p12 = pnand %p1994_p11, %p2400_p6 }
  0x45   : > { %p2001_p5 = por %p2000_p3, %p1999_p1 }
  0x46   : > { %p1997_p13 = pneg %p1996_p12 }
  0x47   : > { %p2003_p9 = por %p2002_p7, %p2001_p5 }
  0x49   : > { %p2004_p10 = pnand %p2003_p9, %p1997_p13 }
  0x4b   : > { %2007 = shalt.err (!%p2004_p10)
}
  0x4c   : > { %s2008_s1 = scalar_lea.vmem %s2440_s2, 2048  ;;  %s2249_s25 = smov [#allocation8]  }
  0x4d   : > { %p2009_p0 = scmp.ne.s32.totalorder %s2440_s2, %s2008_s1  ;;  %s2013_s20 = sshll.u32 %s2249_s25, 4  ;;  %s2014_s20 = int_to_ptr.vmem [resolvable:$false] %s2013_s20 }
  0x4e   : > { %s2015_s4 = scalar_lea.vmem %s2014_s20, 4096  ;;  %p2016_p12 = scmp.lt.s32.totalorder %s2440_s2, %s2014_s20 }
  0x4f   : > { %p2011_p2 = pnand %p2009_p0, %p2400_p6  ;;  %p2017_p8 = scmp.lt.s32.totalorder %s2015_s4, %s2008_s1 }
  0x51   : > { %p2012_p11 = pneg %p2011_p2  ;;  %p2018_p1 = por %p2017_p8, %p2016_p12 }
  0x53   : > { %p2019_p3 = pnand %p2018_p1, %p2012_p11 }
  0x55   : > { %2022 = shalt.err (!%p2019_p3)
}
  0x56   : > { %s2900_s8 = smov 4   ;;  %s2901_s29 = smov 64  }
  0x57   : > { %s2902_s9 = smov 128   ;;  %s2472_s16 = sadd.s32 4294967295, %s2243_s19  }
  0x58   : > { %1782 = dma.hbm_to_vmem [thread:$0]  (!%p2385_p4), %s2437_s6, 2048, %s2440_s2, %s2444_s27, %s2902_s9, %s2901_s29, %s2900_s8  }
  0x59   : > { %s1574_s1 = sadd.s32 4294967294, %s2243_s19   ;;  %s40_s25 = sadd.s32 1, %s2235_s17 }
  0x5a   : > { %s43_s20 = sadd.s32 1, %s2239_s18  ;;  %p41_p8 = scmp.ge.s32.totalorder %s40_s25, 2 }
  0x5b   : > { %s50_s4 = sadd.s32 1, %s2223_s14  ;;  %p57_p13 = scmp.ne.s32.totalorder %s2223_s14, %s2219_s13 }
  0x5c   : > { %p63_p5 = scmp.ne.s32.totalorder %s2219_s13, %s2215_s12  ;;  %s2953_s25 = smov (%p41_p8, %s40_s25), 0 }
  0x5d   : > { %2903 = sst [smem:[#allocation24_spill]] %s2953_s25  ;;  %s2955_s20 = smov (!%p41_p8, %s43_s20), %s2239_s18 }
  0x5e   : > { %p2904_p7 = scmp.eq.s32.totalorder %s2243_s19, 0  ;;  %p64_p10 = scmp.eq.s32.totalorder %s2472_s16, 0 }
  0x5f   : > { %p45_p0 = scmp.ge.s32.totalorder %s2955_s20, 2  ;;  %s73_s6 = ssub.s32 %s2235_s17, %s2953_s25 }
  0x60   : > { %p2490_p9 = por %p2904_p7, %p57_p13  ;;  %p2500_p2 = por %p64_p10, %p63_p5 }
  0x61   : > { %p74_p11 = scmp.eq.s32.totalorder %s73_s6, 0  ;;  %s2957_s20 = smov (%p45_p0, %s2955_s20), 0 }
  0x62   : > { %s2906_s5 = scalar_select %p2500_p2, 1, 0 }
  0x63   : > { %2908 = sst [smem:[#allocation26_spill]] %s2957_s20  ;;  %s2909_s15 = sadd.s32 1, %s2211_s11 }
  0x64   : > { %2907 = sst [smem:[#allocation25_spill]] %s2906_s5  ;;  %s47_s27 = ssub.s32 %s2239_s18, %s2957_s20 }
  0x65   : > { %s2509_s21 = scalar_select %p74_p11, %s2211_s11, %s2909_s15  }
  0x66   : > { %p89_p12 = scmp.ne.s32.totalorder %s2207_s10, %s2203_s30  ;;  %p48_p1 = scmp.eq.s32.totalorder %s47_s27, 0 }
  0x67   : > { %2910 = sst [smem:[#allocation27_spill]] %s2509_s21  ;;  %p290_p3 = scmp.eq.s32.totalorder %s2472_s16, 3 }
  0x68   : > { %p2516_p8 = por %p89_p12, %p64_p10  ;;  %p296_p7 = scmp.eq.s32.totalorder %s1574_s1, 3 }
  0x69   : > { %s2521_s5 = scalar_select %p48_p1, %s2223_s14, %s50_s4  }
  0x6a   : > { %s2911_s25 = scalar_select %p2516_p8, 1, 0 }
  0x6b   : > { %2913 = sst [smem:[#allocation29_spill]] %s2521_s5  ;;  %p2526_p0 = por %p290_p3, %p57_p13 }
  0x6c   : > { %2912 = sst [smem:[#allocation28_spill]] %s2911_s25  ;;  %p2533_p11 = por %p296_p7, %p63_p5 }
  0x6d   : > { %s2914_s6 = scalar_select %p2526_p0, 1, 0 }
  0x6e   : > { %s2915_s15 = scalar_select %p2533_p11, 1, 0 }
  0x6f   : > { %s319_s30 = sand.u32 1, %s2223_s14   ;;  %s1672_s27 = sshll.u32 %s2239_s18, 8 }
  0x70   : > { %2916 = sst [smem:[#allocation30_spill]] %s2915_s15  ;;  %s1577_s20 = sshll.u32 %s319_s30, 4 }
  0x71   : > { %s2542_s25 = scalar_lea.hbm %s2840_s0, %s1672_s27  ;;  %s323_s1 = scalar_lea.vmem [#allocation2], %s1577_s20 }
  0x72   : > { %s331_s4 = sshll.u32 %s323_s1, 4  ;;  %p2917_p13 = scmp.lt.s32.totalorder %s2243_s19, 4  ;;  %s2552_s4 = int_to_ptr.vmem [resolvable:$true] %s331_s4 }
  0x73   : > { %s2558_s21 = scalar_lea.hbm %s2843_s3, %s2373_s23  ;;  %s320_s27 = scalar_lea.sflag [#allocation3], %s319_s30 }
  0x74   : > { %p2548_p5 = pnand %p2917_p13, %p2490_p9  ;;  %s2023_s14 = scalar_lea.hbm %s2542_s25, 256 }
  0x75   : > { %p2024_p10 = scmp.ne.s32.totalorder %s2542_s25, %s2023_s14  ;;  %s2028_s1 = scalar_lea.hbm %s2840_s0, 512 }
  0x76   : > { %p2025_p12 = pneg %p2548_p5  ;;  %p2029_p3 = scmp.lt.u32.totalorder %s2542_s25, %s2840_s0 }
  0x77   : > { %p2030_p7 = scmp.lt.u32.totalorder %s2028_s1, %s2023_s14  ;;  %p2032_p11 = scmp.lt.u32.totalorder %s2023_s14, %s2542_s25 }
  0x78   : > { %p2026_p9 = pnand %p2025_p12, %p2024_p10 }
  0x79   : > { %p2031_p13 = por %p2030_p7, %p2029_p3 }
  0x7a   : > { %p2027_p1 = pneg %p2026_p9 }
  0x7b   : > { %p2033_p0 = por %p2032_p11, %p2031_p13 }
  0x7d   : > { %p2034_p8 = pnand %p2033_p0, %p2027_p1 }
  0x7f   : > { %2037 = shalt.err (!%p2034_p8)
}
  0x80   : > { %s2038_s18 = scalar_lea.vmem %s2552_s4, 256  ;;  %s2250_s23 = smov [#allocation2]  }
  0x81   : > { %p2039_p10 = scmp.ne.s32.totalorder %s2552_s4, %s2038_s18  ;;  %s2043_s30 = sshll.u32 %s2250_s23, 4  ;;  %s2044_s30 = int_to_ptr.vmem [resolvable:$false] %s2043_s30 }
  0x82   : > { %s2045_s12 = scalar_lea.vmem %s2044_s30, 512  ;;  %p2046_p4 = scmp.lt.s32.totalorder %s2552_s4, %s2044_s30 }
  0x83   : > { %p2041_p9 = pnand %p2039_p10, %p2025_p12  ;;  %p2047_p3 = scmp.lt.s32.totalorder %s2045_s12, %s2038_s18 }
  0x85   : > { %p2042_p2 = pneg %p2041_p9  ;;  %p2048_p7 = por %p2047_p3, %p2046_p4 }
  0x87   : > { %p2049_p11 = pnand %p2048_p7, %p2042_p2 }
  0x89   : > { %2052 = shalt.err (!%p2049_p11)
}
  0x8a   : > { %1773 = dma.hbm_to_vmem [thread:$0]  (!%p2548_p5), %s2542_s25, 256, %s2552_s4, %s320_s27  }
  0x8b   : > { %s368_s14 = scalar_lea.vmem [#allocation7], %s2375_s24  ;;  %s1674_s11 = sshll.u32 %s2235_s17, 11 }
  0x8c   : > { %s374_s15 = sshll.u32 %s368_s14, 4  ;;  %s2053_s20 = scalar_lea.hbm %s2558_s21, 2048  ;;  %s2586_s15 = int_to_ptr.vmem [resolvable:$true] %s374_s15 }
  0x8d   : > { %p2054_p4 = scmp.ne.s32.totalorder %s2558_s21, %s2053_s20  ;;  %s2058_s1 = scalar_lea.hbm %s2843_s3, 4096 }
  0x8e   : > { %p2059_p0 = scmp.lt.u32.totalorder %s2558_s21, %s2843_s3  ;;  %p2060_p12 = scmp.lt.u32.totalorder %s2058_s1, %s2053_s20 }
  0x8f   : > { %p2056_p2 = pnand %p2054_p4, %p2400_p6  ;;  %p2062_p1 = scmp.lt.u32.totalorder %s2053_s20, %s2558_s21 }
  0x90   : > { %p2061_p5 = por %p2060_p12, %p2059_p0 }
  0x91   : > { %p2057_p8 = pneg %p2056_p2 }
  0x92   : > { %p2063_p13 = por %p2062_p1, %p2061_p5 }
  0x94   : > { %p2064_p10 = pnand %p2063_p13, %p2057_p8 }
  0x96   : > { %2067 = shalt.err (!%p2064_p10)
}
  0x97   : > { %s2068_s25 = scalar_lea.vmem %s2586_s15, 2048  ;;  %s2251_s4 = smov [#allocation7]  }
  0x98   : > { %p2069_p9 = scmp.ne.s32.totalorder %s2586_s15, %s2068_s25  ;;  %s2073_s27 = sshll.u32 %s2251_s4, 4  ;;  %s2074_s27 = int_to_ptr.vmem [resolvable:$false] %s2073_s27 }
  0x99   : > { %s2075_s30 = scalar_lea.vmem %s2074_s27, 4096  ;;  %p2076_p11 = scmp.lt.s32.totalorder %s2586_s15, %s2074_s27 }
  0x9a   : > { %p2071_p3 = pnand %p2069_p9, %p2400_p6  ;;  %p2077_p4 = scmp.lt.s32.totalorder %s2075_s30, %s2068_s25 }
  0x9c   : > { %p2072_p7 = pneg %p2071_p3  ;;  %p2078_p2 = por %p2077_p4, %p2076_p11 }
  0x9e   : > { %p2079_p0 = pnand %p2078_p2, %p2072_p7 }
  0xa0   : > { %2082 = shalt.err (!%p2079_p0)
}
  0xa1   : > { %p2919_p8 = scmp.ne.s32.totalorder %s2893_s28, 0  ;;  %s2619_s20 = scalar_lea.hbm %s2847_s7, %s1674_s11 }
  0xa2   : > { %s420_s5 = scalar_lea.vmem [#allocation10], %s2375_s24  ;;  %s2083_s1 = scalar_lea.hbm %s2619_s20, 2048 }
  0xa3   : > { %1779 = dma.hbm_to_vmem [thread:$0]  (!%p2919_p8), %s2558_s21, 2048, %s2586_s15, %s2394_s22, %s2902_s9, %s2901_s29, %s2900_s8  }
  0xa4   : > { %s428_s2 = sshll.u32 %s420_s5, 4  ;;  %p2084_p12 = scmp.ne.s32.totalorder %s2619_s20, %s2083_s1  ;;  %s2622_s2 = int_to_ptr.vmem [resolvable:$true] %s428_s2 }
  0xa5   : > { %s2088_s29 = scalar_lea.hbm %s2847_s7, 4096  ;;  %p2089_p13 = scmp.lt.u32.totalorder %s2619_s20, %s2847_s7 }
  0xa6   : > { %p2086_p5 = pnand %p2084_p12, %p2400_p6  ;;  %p2090_p10 = scmp.lt.u32.totalorder %s2088_s29, %s2083_s1 }
  0xa7   : > { %p2092_p3 = scmp.lt.u32.totalorder %s2083_s1, %s2619_s20 }
  0xa8   : > { %p2087_p1 = pneg %p2086_p5  ;;  %p2091_p9 = por %p2090_p10, %p2089_p13 }
  0xaa   : > { %p2093_p7 = por %p2092_p3, %p2091_p9 }
  0xac   : > { %p2094_p11 = pnand %p2093_p7, %p2087_p1 }
  0xae   : > { %2097 = shalt.err (!%p2094_p11)
}
  0xaf   : > { %s2098_s24 = scalar_lea.vmem %s2622_s2, 2048  ;;  %s2252_s11 = smov [#allocation10]  }
  0xb0   : > { %p2099_p4 = scmp.ne.s32.totalorder %s2622_s2, %s2098_s24  ;;  %s2103_s18 = sshll.u32 %s2252_s11, 4  ;;  %s2104_s18 = int_to_ptr.vmem [resolvable:$false] %s2103_s18 }
  0xb1   : > { %s2105_s23 = scalar_lea.vmem %s2104_s18, 4096  ;;  %p2106_p12 = scmp.lt.s32.totalorder %s2622_s2, %s2104_s18 }
  0xb2   : > { %p2101_p2 = pnand %p2099_p4, %p2400_p6  ;;  %p2107_p5 = scmp.lt.s32.totalorder %s2105_s23, %s2098_s24 }
  0xb4   : > { %p2102_p0 = pneg %p2101_p2  ;;  %p2108_p13 = por %p2107_p5, %p2106_p12 }
  0xb6   : > { %p2109_p10 = pnand %p2108_p13, %p2102_p0 }
  0xb8   : > { %2112 = shalt.err (!%p2109_p10)
}
  0xb9   : > { %s2253_s25 = smov 8   ;;  %s2920_s4 = sld [smem:[#allocation23_spill]] }
  0xba   : > { %s2921_s26 = sld [smem:[#allocation22_spill]] }
  0xbf   : > { %1785 = dma.hbm_to_vmem [thread:$0]  (!%p2919_p8), %s2619_s20, 2048, %s2622_s2, %s2920_s4, %s2902_s9, %s2902_s9, %s2253_s25  }
  0xc0   : > { %p2922_p6 = scmp.ne.s32.totalorder %s2921_s26, 0 }
  0xc1   : > { %s2923_s27 = sld [smem:[#allocation25_spill]] (!%p2922_p6)  ;;  %s2651_s30 = sand.u32 (!%p2922_p6), 1, %s2219_s13  }
  0xc2   : > { %440 = sbr.rel (%p2922_p6) target bundleno = 1476 (0x5c4), region = 56  ;;  %s1591_s12 = sshll.u32 (!%p2922_p6), %s2651_s30, 4 }
  0xc3   : > { %s443_s14 = scalar_lea.sflag (!%p2922_p6), [#allocation3], %s2651_s30  ;;  %s2657_s28 = scalar_lea.vmem (!%p2922_p6), [#allocation2], %s1591_s12 }
  0xc7   : > { %p2924_p1 = scmp.ne.s32.totalorder (!%p2922_p6), %s2923_s27, 0 }
  0xc9   : > { %2186 = dma.done.wait (%p2924_p1), %s443_s14, 256  }
  0xca   : > { %2188 = vsyncadd (%p2924_p1), %s443_s14, 4294967040  ;;  %s2925_s9 = sld [smem:[#allocation28_spill]]  ;;  %s451_s20 = sand.u32 1, %s2472_s16  }
  0xcb   : > { %s453_s5 = sand.u32 1, %s2207_s10   ;;  %s452_s1 = scalar_lea.sflag [#allocation6], %s451_s20 }
  0xcc   : > { %s2665_s2 = sshll.u32 %s453_s5, 7 }
  0xcd   : > { %s2668_s22 = scalar_lea.vmem [#allocation5], %s2665_s2 }
  0xd0   : > { %p2926_p8 = scmp.ne.s32.totalorder %s2925_s9, 0 }
  0xd2   : > { %2190 = dma.done.wait (%p2926_p8), %s452_s1, 4096  }
  0xd3   : > { %2192 = vsyncadd (%p2926_p8), %s452_s1, 4294963200  ;;  %s2675_s8 = scalar_lea.vmem [#allocation7], %s2665_s2  ;;  %s470_s29 = scalar_lea.sflag [#allocation9], %s451_s20 }
  0xd4   : > { %s2678_s21 = scalar_lea.vmem [#allocation8], %s2665_s2 }
  0xd5   : > { %2194 = dma.done.wait (%p2926_p8), %s470_s29, 4096  }
  0xd6   : > { %2196 = vsyncadd (%p2926_p8), %s470_s29, 4294963200  ;;  %v1887_v0 = vld [vmem:[%s2675_s8 + $0x40] sm:$0xff]   ;;  %v1889_v2 = vld [vmem:[%s2675_s8 + $0x48] sm:$0xff]   ;;  %s2927_s16 = sld [smem:[#allocation19_spill]]  ;;  %v2254_v52 = vmov 0.0   ;;  %vm2255_vm0 = vmmov 0  }
  0xd7   : > { %v1888_v1 = vld [vmem:[%s2675_s8] sm:$0xff]   ;;  %1698 = vmatprep.subr.bf16.mxu1 %v1887_v0  ;;  %v1891_v4 = vld [vmem:[%s2675_s8 + $0x8] sm:$0xff]   ;;  %v1893_v6 = vld [vmem:[%s2675_s8 + $0x50] sm:$0xff]   ;;  %s2928_s18 = sld [smem:[#allocation33_spill]]  ;;  %s2929_s26 = sld [smem:[#allocation32_spill]]  ;;  %vm1152_vm1 = vcmask 1043456  }
  0xd8   : > { %1699 = vmatpush3.bf16.msra.mxu1 %v1888_v1  ;;  %v1890_v3 = vld [vmem:[%s2668_s22 + $0x40] sm:$0xff]   ;;  %v1894_v7 = vld [vmem:[%s2668_s22 + $0x48] sm:$0xff]   ;;  %v1895_v8 = vld [vmem:[%s2675_s8 + $0x10] sm:$0xff]   ;;  %s2930_s9 = sld [smem:[#allocation35_spill]]  ;;  %vm1135_vm3 = vcmask 64512   ;;  %s2751_s5 = scalar_lea.vmem [#allocation10], %s2665_s2 }
  0xd9   : > { %1700 = vmatprep.subr.bf16.mxu1 %v1889_v2  ;;  %1676 = vmatprep.subr.bf16.mxu0 %v1890_v3  ;;  %v1892_v5 = vld [vmem:[%s2668_s22] sm:$0xff]   ;;  %v1896_v9 = vld [vmem:[%s2668_s22 + $0x8] sm:$0xff]   ;;  %v1897_v10 = vld [vmem:[%s2675_s8 + $0x58] sm:$0xff]   ;;  %s545_s2 = scalar_lea.vmem [#allocation11], %s1591_s12 }
  0xda   : > { %1677 = vmatpush3.bf16.msra.mxu0 %v1892_v5  ;;  %v1898_v11 = vld [vmem:[%s2668_s22 + $0x50] sm:$0xff]   ;;  %v1899_v12 = vld [vmem:[%s2675_s8 + $0x18] sm:$0xff]   ;;  %v1901_v14 = vld [vmem:[%s2675_s8 + $0x60] sm:$0xff]  }
  0xdb   : > { %1678 = vmatprep.subr.bf16.mxu0 %v1894_v7  ;;  %v1900_v13 = vld [vmem:[%s2668_s22 + $0x10] sm:$0xff]   ;;  %v1902_v15 = vld [vmem:[%s2668_s22 + $0x58] sm:$0xff]   ;;  %v1903_v16 = vld [vmem:[%s2675_s8 + $0x20] sm:$0xff]  }
  0xdc   : > { %1701 = vmatpush3.bf16.msra.mxu1 %v1891_v4  ;;  %v1904_v17 = vld [vmem:[%s2668_s22 + $0x18] sm:$0xff]   ;;  %v1905_v18 = vld [vmem:[%s2675_s8 + $0x68] sm:$0xff]   ;;  %v1906_v19 = vld [vmem:[%s2668_s22 + $0x60] sm:$0xff]   ;;  %p546_p9 = scmp.lt.s32.totalorder %s2927_s16, 1  ;;  %p1665_p3 = scmp.ne.s32.totalorder %s2927_s16, 0 }
  0xdd   : > { %1702 = vmatprep.subr.bf16.mxu1 %v1893_v6  ;;  %v1907_v20 = vld [vmem:[%s2675_s8 + $0x28] sm:$0xff]   ;;  %v1908_v21 = vld [vmem:[%s2668_s22 + $0x20] sm:$0xff]   ;;  %v1909_v22 = vld [vmem:[%s2675_s8 + $0x70] sm:$0xff]  }
  0xde   : > { %1679 = vmatpush3.bf16.msra.mxu0 %v1896_v9  ;;  %v1910_v23 = vld [vmem:[%s2668_s22 + $0x68] sm:$0xff]   ;;  %v1911_v24 = vld [vmem:[%s2675_s8 + $0x30] sm:$0xff]   ;;  %v1913_v26 = vld [vmem:[%s2675_s8 + $0x78] sm:$0xff]   ;;  %s547_s15 = scalar_select %p546_p9, %s2927_s16, 1 }
  0xdf   : > { %1680 = vmatprep.subr.bf16.mxu0 %v1898_v11  ;;  %v1912_v25 = vld [vmem:[%s2668_s22 + $0x28] sm:$0xff]   ;;  %v1914_v27 = vld [vmem:[%s2668_s22 + $0x70] sm:$0xff]   ;;  %v1915_v28 = vld [vmem:[%s2675_s8 + $0x38] sm:$0xff]   ;;  %s2931_s8 = sld [smem:[#allocation36_spill]] (!%p1665_p3) }
  0xe0   : > { %1703 = vmatpush3.bf16.msra.mxu1 %v1895_v8  ;;  %v1916_v29 = vld [vmem:[%s2668_s22 + $0x30] sm:$0xff]   ;;  %v558_v30 = vld [vmem:[%s2657_s28 + $0x8] sm:$0xff]  ;;  %v1919_v36 = vld [vmem:[%s2678_s21 + $0x40] sm:$0xff]   ;;  %s551_s23 = scalar_lea.vmem %s2928_s18, %s547_s15  ;;  %s548_s27 = scalar_lea.vmem %s2929_s26, %s547_s15 }
  0xe1   : > { %1704 = vmatprep.subr.bf16.mxu1 %v1897_v10  ;;  %v557_v31 = vld [vmem:[%s2657_s28] sm:$0xff]  ;;  %v560_v32 = vpack.c.bf16 %v558_v30, %v558_v30  ;;  %v1917_v34 = vld [vmem:[%s2668_s22 + $0x78] sm:$0xff]   ;;  %v1921_v38 = vld [vmem:[%s2678_s21 + $0x48] sm:$0xff]   ;;  %s554_s20 = scalar_lea.vmem %s2930_s9, %s547_s15 }
  0xe2   : > { %1681 = vmatpush3.bf16.msra.mxu0 %v1900_v13  ;;  %v559_v33 = vpack.c.bf16 %v557_v31, %v557_v31  ;;  %v1918_v35 = vld [vmem:[%s2668_s22 + $0x38] sm:$0xff]   ;;  %v1920_v37 = vld [vmem:[%s2678_s21] sm:$0xff]   ;;  %v1922_v39 = vld [vmem:[%s2678_s21 + $0x8] sm:$0xff]  }
  0xe3   : > { %1682 = vmatprep.subr.bf16.mxu0 %v1902_v15  ;;  %903 = vmatprep.mubr.bf16.mxu1 %v560_v32  ;;  %v1923_v40 = vld [vmem:[%s2678_s21 + $0x50] sm:$0xff]   ;;  %v1925_v42 = vld [vmem:[%s2678_s21 + $0x58] sm:$0xff]   ;;  %v1927_v44 = vld [vmem:[%s2678_s21 + $0x60] sm:$0xff]  }
  0xe4   : > { %1705 = vmatpush3.bf16.msra.mxu1 %v1899_v12  ;;  %728 = vmatprep.mubr.bf16.mxu0 %v560_v32  ;;  %v1924_v41 = vld [vmem:[%s2678_s21 + $0x10] sm:$0xff]   ;;  %v1926_v43 = vld [vmem:[%s2678_s21 + $0x18] sm:$0xff]   ;;  %v1928_v45 = vld [vmem:[%s2678_s21 + $0x20] sm:$0xff]  }
  0xe5   : > { %1706 = vmatprep.subr.bf16.mxu1 %v1901_v14  ;;  %v1929_v46 = vld [vmem:[%s2678_s21 + $0x68] sm:$0xff]   ;;  %v1931_v48 = vld [vmem:[%s2678_s21 + $0x70] sm:$0xff]   ;;  %v1933_v50 = vld [vmem:[%s2678_s21 + $0x78] sm:$0xff]   ;;  %v1129_v14 = vlaneseq }
  0xe6   : > { %1683 = vmatpush3.bf16.msra.mxu0 %v1904_v17  ;;  %v1930_v47 = vld [vmem:[%s2678_s21 + $0x28] sm:$0xff]   ;;  %v1932_v49 = vld [vmem:[%s2678_s21 + $0x30] sm:$0xff]   ;;  %v1934_v51 = vld [vmem:[%s2678_s21 + $0x38] sm:$0xff]  }
  0xe7   : > { %1684 = vmatprep.subr.bf16.mxu0 %v1906_v19  ;;  %v1614_v54 = vld [vmem:[%s551_s23] ss:$0 sm:$0xff]  ;;  %v2745_v15 = vshrl.u32 %v1129_v14, 7 }
  0xe8   : > { %1707 = vmatpush3.bf16.msra.mxu1 %v1903_v16  ;;  %v1597_v61 = vld [vmem:[%s548_s27] ss:$0 sm:$0xff]  ;;  %v1132_v16 = vand.u32 127, %v1129_v14 }
  0xe9   : > { %1708 = vmatprep.subr.bf16.mxu1 %v1905_v18  ;;  %v1631_v6 = vld [vmem:[%s554_s20] ss:$0 sm:$0xff] }
  0xea   : > { %1685 = vmatpush3.bf16.msra.mxu0 %v1908_v21  ;;  %vm1133_vm2 = vcmp.le.s32.totalorder %v1132_v16, %v2745_v15 }
  0xeb   : > { %1686 = vmatprep.subr.bf16.mxu0 %v1910_v23 }
  0xec   : > { %1709 = vmatpush3.bf16.msra.mxu1 %v1907_v20 }
  0xed   : > { %1710 = vmatprep.subr.bf16.mxu1 %v1909_v22 }
  0xee   : > { %1687 = vmatpush3.bf16.msra.mxu0 %v1912_v25 }
  0xef   : > { %1688 = vmatprep.subr.bf16.mxu0 %v1914_v27 }
  0xf0   : > { %1711 = vmatpush3.bf16.msra.mxu1 %v1911_v24 }
  0xf1   : > { %1712 = vmatprep.subr.bf16.mxu1 %v1913_v26 }
  0xf2   : > { %1689 = vmatpush3.bf16.msra.mxu0 %v1916_v29  ;;  %v1937_v29 = vld [vmem:[%s2751_s5 + $0x4] ss:$8 sps:$4 sm:$0xff]  }
  0xf3   : > { %1690 = vmatprep.subr.bf16.mxu0 %v1917_v34 }
  0xf4   : > { %1713 = vmatpush3.bf16.msra.mxu1 %v1915_v28 }
  0xf5   : > { %1752 = vmatprep.subr.bf16.mxu1 %v2254_v52 }
  0xf6   : > { %1691 = vmatpush3.bf16.msra.mxu0 %v1918_v35  ;;  %v1940_v35 = vld [vmem:[%s2751_s5 + $0x14] ss:$8 sps:$4 sm:$0xff]  }
  0xf7   : > { %904 = vmatmul.mubr.bf16.vlgmr.msra.gmra.mrb[0].mxu1 %v559_v33  ;;  %1720 = vmatprep.subr.bf16.mxu0 %v1919_v36  ;;  %v1938_v36 = vld [vmem:[%s2751_s5 + $0x10] ss:$8 sps:$4 sm:$0xff]  }
  0xf8   : > { %1754 = vmatprep.mubr.msk.bf16.mxu1 %vm2255_vm0, %v2254_v52 }
  0xf9   : > { %729 = vmatmul.mubr.bf16.vlgmr.msra.gmra.mrb[0].mxu0 %v559_v33 }
  0xfa   : > { %1721 = vmatpush3.bf16.msra.mxu0 %v1920_v37  ;;  %1078 = vmatprep.mubr.bf16.mxu0 %v560_v32  ;;  %v1943_v37 = vld [vmem:[%s2751_s5 + $0x24] ss:$8 sps:$4 sm:$0xff]  }
  0xfb   : > { %1722 = vmatprep.subr.bf16.mxu0 %v1921_v38  ;;  %v1941_v38 = vld [vmem:[%s2751_s5 + $0x20] ss:$8 sps:$4 sm:$0xff]  }
  0xfe   : > { %1723 = vmatpush3.bf16.msra.mxu0 %v1922_v39  ;;  %v1946_v39 = vld [vmem:[%s2751_s5 + $0x34] ss:$8 sps:$4 sm:$0xff]  }
  0xff   : > { %1724 = vmatprep.subr.bf16.mxu0 %v1923_v40  ;;  %v1944_v40 = vld [vmem:[%s2751_s5 + $0x30] ss:$8 sps:$4 sm:$0xff]  }
 0x102   : > { %1725 = vmatpush3.bf16.msra.mxu0 %v1924_v41  ;;  %v1949_v41 = vld [vmem:[%s2751_s5 + $0x44] ss:$8 sps:$4 sm:$0xff]  }
 0x103   : > { %1726 = vmatprep.subr.bf16.mxu0 %v1925_v42  ;;  %v1947_v42 = vld [vmem:[%s2751_s5 + $0x40] ss:$8 sps:$4 sm:$0xff]  }
 0x106   : > { %1727 = vmatpush3.bf16.msra.mxu0 %v1926_v43  ;;  %v1952_v43 = vld [vmem:[%s2751_s5 + $0x54] ss:$8 sps:$4 sm:$0xff]  }
 0x107   : > { %1728 = vmatprep.subr.bf16.mxu0 %v1927_v44  ;;  %v1950_v44 = vld [vmem:[%s2751_s5 + $0x50] ss:$8 sps:$4 sm:$0xff]  }
 0x10a   : > { %1729 = vmatpush3.bf16.msra.mxu0 %v1928_v45  ;;  %v1955_v45 = vld [vmem:[%s2751_s5 + $0x64] ss:$8 sps:$4 sm:$0xff]  }
 0x10b   : > { %1730 = vmatprep.subr.bf16.mxu0 %v1929_v46  ;;  %v1953_v46 = vld [vmem:[%s2751_s5 + $0x60] ss:$8 sps:$4 sm:$0xff]  }
 0x10e   : > { %1731 = vmatpush3.bf16.msra.mxu0 %v1930_v47  ;;  %v1958_v47 = vld [vmem:[%s2751_s5 + $0x74] ss:$8 sps:$4 sm:$0xff]  }
 0x10f   : > { %1732 = vmatprep.subr.bf16.mxu0 %v1931_v48  ;;  %v1956_v48 = vld [vmem:[%s2751_s5 + $0x70] ss:$8 sps:$4 sm:$0xff]  }
 0x112   : > { %1733 = vmatpush3.bf16.msra.mxu0 %v1932_v49  ;;  %v2256_v49 = vmov 0  }
 0x113   : > { %1734 = vmatprep.subr.bf16.mxu0 %v1933_v50 }
 0x116   : > { %1735 = vmatpush3.bf16.msra.mxu0 %v1934_v51 }
 0x117   : > { %1746 = vmatprep.subr.bf16.mxu0 %v2254_v52 }
 0x119   : > { %1079 = vmatmul.mubr.bf16.vlgmr.msra.gmra.mrb[4].mxu0 %v559_v33  ;;  %v1935_v33 = vld [vmem:[%s2751_s5] ss:$8 sps:$4 sm:$0xff]  }
 0x11a   : > { %1748 = vmatprep.mubr.msk.bf16.mxu0 %vm2255_vm0, %v2254_v52 }
 0x1ca   : > { %v1714_v53 = vpop.f32.mrb[0].mxu1 }
 0x1cb   : > { %v1715_v55 = vpop.f32.mrb[1].mxu1 }
 0x1cc   : > { %v1716_v56 = vadd.f32 %v1715_v55, %v1714_v53  ;;  %v1717_v57 = vpop.f32.mrb[2].mxu1  ;;  %v1692_v60 = vpop.f32.mrb[0].mxu0 }
 0x1cd   : > { %v1718_v58 = vpop.f32.mrb[3].mxu1  ;;  %v1693_v62 = vpop.f32.mrb[1].mxu0 }
 0x1ce   : > { %v906_v59 = vadd.f32 %v1716_v56, %v1614_v54  ;;  %v1694_v0 = vadd.f32 %v1693_v62, %v1692_v60  ;;  %v1695_v1 = vpop.f32.mrb[2].mxu0  ;;  %v1342_v60 = vsub.s32 (!%p1665_p3), 0, %v2745_v15 }
 0x1cf   : > { %v1696_v2 = vpop.f32.mrb[3].mxu0 }
 0x1d0   : > { %v1087_v63 = vpack.c.bf16 %v906_v59, %v906_v59  ;;  %v731_v3 = vadd.f32 %v1694_v0, %v1597_v61  ;;  %v1338_v59 = vld [vmem:[%s2931_s8] sm:$0x3] (!%p1665_p3)  ;;  %v1346_v61 = vsub.s32 (!%p1665_p3), 1, %v2745_v15 }
 0x1d1   : > { %v1343_v62 = vrot.slane (!%p1665_p3), %v1338_v59, %v1342_v60 }
 0x1d2   : > { %1747 = vmatpush3.bf16.xpose.msra.mxu0 %v1087_v63  ;;  %v1086_v4 = vpack.c.bf16 %v731_v3, %v731_v3  ;;  %v1347_v63 = vrot.slane (!%p1665_p3), %v1338_v59, %v1346_v61 }
 0x1d9   : > { %1749 = vmatmul.mubr.bf16.vlgmr.msra.gmra.mrb[8].mxu0 %v1086_v4 }
 0x1ec   : > { %v1736_v5 = vpop.f32.mrb[4].mxu0 }
 0x1ed   : > { %v1737_v7 = vpop.f32.mrb[5].mxu0 }
 0x1ee   : > { %v1738_v8 = vadd.f32 %v1737_v7, %v1736_v5  ;;  %v1739_v9 = vpop.f32.mrb[6].mxu0 }
 0x1ef   : > { %v1740_v10 = vpop.f32.mrb[7].mxu0 }
 0x1f0   : > { %v1081_v11 = vadd.f32 %v1738_v8, %v1631_v6 }
 0x1f2   : > { %v1148_v12 = vpack.c.bf16 %v1081_v11, %v1081_v11 }
 0x1f4   : > { %v1154_v13 = vsel %vm1152_vm1, %v1148_v12, 0 }
 0x1f5   : > { %1753 = vmatpush3.bf16.msra.mxu1 %v1154_v13 }
 0x1f6   : > { %1293 = vmatprep.subr.bf16.mxu1 %v1937_v29 }
 0x2ac   : > { %v1122_v17 = vpop.f32.mrb[8].mxu0 }
 0x2ad   : > { %v1128_v18 = vmul.f32 0.25, %v1122_v17  ;;  %v1750_v19 = vpop.f32.mrb[9].mxu0 }
 0x2ae   : > { %v1125_v20 = vpop.f32.mrb[10].mxu0 }
 0x2af   : > { %v1751_v21 = vpop.f32.mrb[11].mxu0  ;;  %v1134_v22 = vsel %vm1133_vm2, %v1128_v18, -inf }
 0x2b0   : > { %v1136_v23 = vsel %vm1135_vm3, %v1134_v22, -inf }
 0x2b1   : > { %1137 = vmax.xlane.f32.xlu0 %v1136_v23 }
 0x33e   : > { %v1138_v24 = vpop.xlane.xlu0 %1137 }
 0x33f   : > { %v1139_v25 = vsub.f32 %v1134_v22, %v1138_v24 }
 0x341   : > { %v1140_v26 = vmul.f32 1.442695, %v1139_v25 }
 0x343   : > { %1959 = vpow2.f32 %v1140_v26 }
 0x34d   : > { %v1960_v27 = vpop.eup %1959 }
 0x34e   : > { %v1142_v28 = vsel %vm1135_vm3, %v1960_v27, 0.0 }
 0x34f   : > { %1143 = vadd.xlane.f32.xlu0 %v1142_v28 }
 0x3dc   : > { %v1144_v30 = vpop.xlane.xlu0 %1143 }
 0x3dd   : > { %1961 = vrcp.f32 %v1144_v30 }
 0x3e7   : > { %v1962_v31 = vpop.eup %1961 }
 0x3e8   : > { %v1146_v32 = vmul.f32 %v1962_v31, %v1960_v27 }
 0x3ea   : > { %v1147_v34 = vpack.c.bf16 %v1146_v32, %v1146_v32 }
 0x3ec   : > { %1755 = vmatmul.mubr.msk.bf16.vlgmr.msra.gmra.mrb[4].mxu1 %vm1135_vm3, %v1147_v34 }
 0x3ed   : > { %1294 = vmatpush1.bf16.msra.mxu1 %v1935_v33  ;;  %1325 = vmatprep.mubr.bf16.mxu1 %v2256_v49 }
 0x3ee   : > { %1295 = vmatprep.subr.bf16.mxu1 %v1940_v35 }
 0x3f1   : > { %1296 = vmatpush1.bf16.msra.mxu1 %v1938_v36 }
 0x3f2   : > { %1297 = vmatprep.subr.bf16.mxu1 %v1943_v37 }
 0x3f5   : > { %1298 = vmatpush1.bf16.msra.mxu1 %v1941_v38 }
 0x3f6   : > { %1299 = vmatprep.subr.bf16.mxu1 %v1946_v39 }
 0x3f9   : > { %1300 = vmatpush1.bf16.msra.mxu1 %v1944_v40 }
 0x3fa   : > { %1301 = vmatprep.subr.bf16.mxu1 %v1949_v41 }
 0x3fd   : > { %1302 = vmatpush1.bf16.msra.mxu1 %v1947_v42 }
 0x3fe   : > { %1303 = vmatprep.subr.bf16.mxu1 %v1952_v43 }
 0x401   : > { %1304 = vmatpush1.bf16.msra.mxu1 %v1950_v44 }
 0x402   : > { %1305 = vmatprep.subr.bf16.mxu1 %v1955_v45 }
 0x405   : > { %1306 = vmatpush1.bf16.msra.mxu1 %v1953_v46 }
 0x406   : > { %1307 = vmatprep.subr.bf16.mxu1 %v1958_v47 }
 0x409   : > { %1308 = vmatpush1.bf16.msra.mxu1 %v1956_v48 }
 0x4bf   : > { %v1190_v50 = vpop.f32.mrb[4].mxu1 }
 0x4c0   : > { %v1196_v51 = vpack.c.bf16 %v1190_v50, %v1190_v50  ;;  %v1756_v52 = vpop.f32.mrb[5].mxu1 }
 0x4c1   : > { %v1193_v53 = vpop.f32.mrb[6].mxu1 }
 0x4c2   : > { %v1757_v54 = vpop.f32.mrb[7].mxu1  ;;  %1326 = vmatmul.mubr.bf16.vlgmr.msra.gmra.mrb[8].mxu1 %v1196_v51 }
 0x592   : > { %1337 = sbr.rel (%p1665_p3) target bundleno = 1434 (0x59a), region = 80 }
 0x595   : > { %v1327_v55 = vpop.f32.mrb[8].mxu1 }
 0x596   : > { %v1329_v56 = vpop.f32.mrb[9].mxu1  ;;  %v1350_v0 = vadd.f32 (!%p1665_p3), %v1343_v62, %v1327_v55 }
 0x597   : > { %v1331_v57 = vpop.f32.mrb[10].mxu1  ;;  %v1351_v1 = vadd.f32 (!%p1665_p3), %v1347_v63, %v1329_v56 }
 0x598   : > { %v1332_v58 = vpop.f32.mrb[11].mxu1  ;;  %1352 = vst [vmem:[%s545_s2] sm:$0xff] (!%p1665_p3), %v1350_v0 }
 0x599   : > { %1353 = vst [vmem:[%s545_s2 + $0x8] sm:$0xff] %v1351_v1 }
 0x59a PF: > { %s2932_s29 = sld [smem:[#allocation19_spill]] }
 0x5a0   : > { %p1666_p7 = scmp.eq.s32.totalorder %s2932_s29, 0 }
 0x5a1   : > { %v1358_v2 = vld [vmem:[%s545_s2] sm:$0xff] (!%p1666_p7)  ;;  %v1359_v3 = vld [vmem:[%s545_s2 + $0x8] sm:$0xff] (!%p1666_p7) }
 0x5a2   : > { %1357 = sbr.rel (%p1666_p7) target bundleno = 1449 (0x5a9), region = 84  ;;  %v1360_v4 = vadd.f32 (!%p1666_p7), %v1358_v2, %v1327_v55  ;;  %v1361_v5 = vadd.f32 (!%p1666_p7), %v1359_v3, %v1329_v56 }
 0x5a4   : > { %1362 = vst [vmem:[%s545_s2] sm:$0xff] (!%p1666_p7), %v1360_v4  ;;  %1363 = vst [vmem:[%s545_s2 + $0x8] sm:$0xff] (!%p1666_p7), %v1361_v5 }
 0x5a9 PF: > { %s2933_s12 = sld [smem:[#allocation20_spill]]  ;;  %s2934_s24 = sld [smem:[#allocation37_spill]] }
 0x5aa   : > { %s1379_s18 = sshll.u32 %s545_s2, 4  ;;  %s1365_s23 = scalar_lea.sflag [#allocation4], %s2651_s30  ;;  %s1380_s18 = int_to_ptr.vmem [resolvable:$true] %s1379_s18 }
 0x5ab   : > { %s2113_s25 = scalar_lea.vmem %s1380_s18, 256  ;;  %p2935_p4 = scmp.ne.s32.totalorder %s2914_s6, 0 }
 0x5ac   : > { %p2114_p11 = scmp.ne.s32.totalorder %s1380_s18, %s2113_s25  ;;  %s2257_s4 = smov [#allocation11]  }
 0x5ad   : > { %s2117_s26 = sshll.u32 %s2257_s4, 4  ;;  %s2118_s26 = int_to_ptr.vmem [resolvable:$false] %s2117_s26 }
 0x5ae   : > { %p2115_p2 = pnand %p2114_p11, %p2935_p4  ;;  %s2119_s27 = scalar_lea.vmem %s2118_s26, 512 }
 0x5af   : > { %s1675_s21 = sshll.u32 %s2933_s12, 8  ;;  %p2120_p12 = scmp.lt.s32.totalorder %s1380_s18, %s2118_s26 }
 0x5b0   : > { %s2783_s11 = scalar_lea.hbm %s2934_s24, %s1675_s21  ;;  %p2116_p0 = pneg %p2115_p2 }
 0x5b1   : > { %p2121_p5 = scmp.lt.s32.totalorder %s2119_s27, %s2113_s25 }
 0x5b3   : > { %p2122_p13 = por %p2121_p5, %p2120_p12 }
 0x5b5   : > { %p2123_p10 = pnand %p2122_p13, %p2116_p0 }
 0x5b7   : > { %2126 = shalt.err (!%p2123_p10)
}
 0x5b8   : > { %s2127_s30 = scalar_lea.hbm %s2783_s11, 256  ;;  %s2131_s9 = scalar_lea.hbm %s2934_s24, 512 }
 0x5b9   : > { %p2128_p6 = scmp.ne.s32.totalorder %s2783_s11, %s2127_s30  ;;  %p2132_p9 = scmp.lt.u32.totalorder %s2783_s11, %s2934_s24 }
 0x5ba   : > { %p2133_p3 = scmp.lt.u32.totalorder %s2131_s9, %s2127_s30  ;;  %p2135_p11 = scmp.lt.u32.totalorder %s2127_s30, %s2783_s11 }
 0x5bb   : > { %p2129_p1 = pnand %p2128_p6, %p2935_p4 }
 0x5bc   : > { %p2134_p7 = por %p2133_p3, %p2132_p9 }
 0x5bd   : > { %p2130_p8 = pneg %p2129_p1 }
 0x5be   : > { %p2136_p2 = por %p2135_p11, %p2134_p7 }
 0x5c0   : > { %p2137_p0 = pnand %p2136_p2, %p2130_p8 }
 0x5c2   : > { %2140 = shalt.err (!%p2137_p0)
}
 0x5c3   : > { %1768 = dma.vmem_to_hbm [thread:$0]  (%p2935_p4), %s1380_s18, 256, %s2783_s11, %s1365_s23  }
 0x5c4 PF: > { %s2936_s2 = sld [smem:[#allocation17_spill]]  ;;  %s2937_s1 = sld [smem:[#allocation30_spill]] }
 0x5c5   : > { %p1791_p12 = scmp.ge.s32.totalorder %s2243_s19, 2 }
 0x5ca   : > { %s1391_s22 = sand.u32 1, %s2936_s2   ;;  %p2938_p5 = scmp.ne.s32.totalorder %s2937_s1, 0 }
 0x5cb   : > { %s1392_s8 = scalar_lea.sflag [#allocation4], %s1391_s22 }
 0x5cc   : > { %p1787_p13 = pnand %p1791_p12, %p2938_p5 }
 0x5ce   : > { %2198 = dma.done.wait (!%p1787_p13), %s1392_s8, 256  }
 0x5cf   : > { %2200 = vsyncadd (!%p1787_p13), %s1392_s8, 4294967040  ;;  %s31_s19 = sadd.s32 1, %s2243_s19   ;;  %s2939_s29 = sld [smem:[#allocation16_spill]] }
 0x5d0   : > { %p28_p10 = scmp.ge.s32.totalorder %s31_s19, 6   ;;  %s2940_s11 = sld [smem:[#allocation27_spill]] }
 0x5d1   : > { %s2941_s6 = sld [smem:[#allocation18_spill]]  ;;  %s2942_s14 = sld [smem:[#allocation29_spill]] }
 0x5d2   : > { %s2943_s16 = sld [smem:[#allocation21_spill]]  ;;  %s2944_s21 = sld [smem:[#allocation24_spill]] }
 0x5d3   : > { %s2945_s18 = sld [smem:[#allocation26_spill]]  ;;  %s2946_s30 = smov %s2207_s10 }
 0x5d4   : > { %s2948_s12 = smov %s2219_s13  ;;  %s2950_s15 = smov %s2235_s17 }
 0x5d5   : > { %s2947_s10 = smov %s2939_s29  ;;  %30 = sbr.rel (!%p28_p10) target bundleno = 21 (0x15), region = 166 }
 0x5d7   : > { %s2949_s13 = smov %s2941_s6 }
 0x5d8   : > { %s2951_s17 = smov %s2944_s21 }
 0x5dc   :  { %1397 = vsyncpa [#allocation3], 1 }
 0x5dd   :  { %1399 = vsyncpa [#allocation3 + $0x1], 1 }
 0x5de   :  { %1400 = vsyncpa [#allocation6], 1 }
 0x5df   :  { %1402 = vsyncpa [#allocation6 + $0x1], 1 }
 0x5e0   :  { %1403 = vsyncpa [#allocation9], 1 }
 0x5e1   :  { %1405 = vsyncpa [#allocation9 + $0x1], 1 }
 0x5e2   :  { %1406 = vsyncpa [#allocation4], 1 }
 0x5e3   :  { %1408 = vsyncpa [#allocation4 + $0x1], 1 }

</bundles_post_ra>
